<compile_context>
chip_gen: v7x
topology: tpu7x:2x2x1
jax: 0.10.0
libtpu: 0.0.40
codegen_flags: <defaults>
</compile_context>

<pallas_src>
import numpy as np

import jax
import jax.numpy as jnp
from jax.experimental import pallas as pl
from jax.experimental.pallas import tpu as pltpu

EPS = 1e-3  # BatchNorm2d eps


# ---------------- fused Pallas kernel (hot path) ----------------

def _make_kernel(offsets, mcol, count, n_ph, n_tps):
    """offsets[ph][t] = static lane offset of tap t of phase ph into the flat input slab."""
    inv_count = 1.0 / float(count)

    def kernel(x_ref, w_ref, g_ref, b_ref, m_ref, o_ref):
        cout = o_ref.shape[1]
        mask = m_ref[...]                                    # (1, Mcol) f32, 1 on valid cols
        s1 = jnp.zeros((cout, 1), jnp.float32)
        s2 = jnp.zeros((cout, 1), jnp.float32)

        # Pass 1: per-phase matmuls accumulated over the (k/s)^2 taps (in-kernel "im2col"
        # via static lane-offset slices of the VMEM-resident input slab), raw store, and
        # single-pass BN statistics (sum / sum-of-squares).
        for ph in range(n_ph):
            y = jnp.dot(w_ref[ph, 0],
                        x_ref[:, pl.ds(offsets[ph][0], mcol)],
                        preferred_element_type=jnp.float32)
            for t in range(1, n_tps):
                y = y + jnp.dot(w_ref[ph, t],
                                x_ref[:, pl.ds(offsets[ph][t], mcol)],
                                preferred_element_type=jnp.float32)
            y = y * mask                                     # zero the padded / junk columns
            o_ref[ph] = y
            s1 = s1 + jnp.sum(y, axis=1, keepdims=True)
            s2 = s2 + jnp.sum(y * y, axis=1, keepdims=True)

        # Fold BN into per-channel scale / shift (rsqrt goes to the free EUP slot).
        mean = s1 * inv_count
        var = s2 * inv_count - mean * mean                   # biased batch variance
        scale = g_ref[...] * jax.lax.rsqrt(var + EPS)
        shift = b_ref[...] - mean * scale

        # Pass 2: one fused normalize + affine + ReLU sweep over the VMEM-resident output.
        for ph in range(n_ph):
            o_ref[ph] = jnp.maximum(o_ref[ph] * scale + shift, 0.0)

    return kernel


# ---------------- wrapper ----------------

def conv2d_unit_forward(x, w, gamma, beta, stride, padding):
    """x: (N, Cin, H, W); w: (Cin, Cout, k, k) -- PyTorch ConvTranspose2d weight layout."""
    N, Cin, H, W = x.shape
    _, Cout, k, _ = w.shape
    s, p = stride, padding
    Ho = (H - 1) * s - 2 * p + k
    Wo = (W - 1) * s - 2 * p + k
    assert k % s == 0 and Ho % s == 0 and Wo % s == 0, "phase decomposition assumes s | k"
    Qh, Qw = Ho // s, Wo // s
    n_ph, n_tps = s * s, (k // s) * (k // s)

    # ---- static tap metadata (trace-time python ints, zero runtime cost) -------------
    # out[n,o,y,x] = sum_{c,kh,kw} x[n,c,i,j] * w[c,o,kh,kw]  with  y = i*s + kh - p.
    # For phase py = y % s and q = y // s:  kh == (py + p) (mod s),  i = q + (py+p-kh)//s.
    def taps_1d(ph):
        return [(kk, (ph + p - kk) // s) for kk in range(k) if (ph + p - kk) % s == 0]

    taps_h = [taps_1d(py) for py in range(s)]
    taps_w = [taps_1d(px) for px in range(s)]
    dh_all = [d for tt in taps_h for (_, d) in tt]
    dw_all = [d for tt in taps_w for (_, d) in tt]
    pad_h = (max(0, -min(dh_all)), max(0, Qh - 1 + max(dh_all) - (H - 1)))
    pad_w = (max(0, -min(dw_all)), max(0, Qw - 1 + max(dw_all) - (W - 1)))
    Hp, Wp = H + sum(pad_h), W + sum(pad_w)
    Mcol = N * Hp * Wp                                       # lane dim inside the kernel

    kh_idx = np.zeros((n_ph, n_tps), np.int32)
    kw_idx = np.zeros((n_ph, n_tps), np.int32)
    offsets = [[0] * n_tps for _ in range(n_ph)]
    for py in range(s):
        for px in range(s):
            ph = py * s + px
            for a, (kh, dh) in enumerate(taps_h[py]):
                for b, (kw, dw) in enumerate(taps_w[px]):
                    t = a * (k // s) + b
                    kh_idx[ph, t], kw_idx[ph, t] = kh, kw
                    offsets[ph][t] = (dh + pad_h[0]) * Wp + (dw + pad_w[0])
    max_off = max(max(row) for row in offsets)
    Lpad = ((Mcol + max_off + 127) // 128) * 128             # lane-pad the input slab

    # ---- minimal XLA-side glue: cast + pad + flatten the RAW input (no im2col slab) ---
    xp = jnp.pad(x.astype(jnp.bfloat16), ((0, 0), (0, 0), pad_h, pad_w))
    xflat = xp.transpose(1, 0, 2, 3).reshape(Cin, Mcol)
    xflat = jnp.pad(xflat, ((0, 0), (0, Lpad - Mcol)))

    # per-(phase, tap) weight slabs: w_taps[ph, t, o, c] = w[c, o, kh, kw]   (tiny)
    w_taps = w[:, :, kh_idx, kw_idx].transpose(2, 3, 1, 0).astype(jnp.bfloat16)

    gamma2d = gamma.reshape(Cout, 1).astype(jnp.float32)
    beta2d = beta.reshape(Cout, 1).astype(jnp.float32)

    # static validity mask for padded / junk columns (constant-folded at trace time)
    valid = np.zeros((N, Hp, Wp), np.float32)
    valid[:, :Qh, :Qw] = 1.0
    mask = jnp.asarray(valid.reshape(1, Mcol))

    count = n_ph * N * Qh * Qw                               # == N * Ho * Wo
    flops = 2 * n_ph * n_tps * Cout * Cin * Mcol + 8 * n_ph * Cout * Mcol
    bytes_accessed = (Cin * Lpad * 2 + n_ph * n_tps * Cout * Cin * 2 + Mcol * 4
                      + 2 * Cout * 4 + n_ph * Cout * Mcol * 4)

    vmem_spec = pl.BlockSpec(memory_space=pltpu.MemorySpace.VMEM)
    out_sub = pl.pallas_call(
        _make_kernel(offsets, Mcol, count, n_ph, n_tps),
        out_shape=jax.ShapeDtypeStruct((n_ph, Cout, Mcol), jnp.float32),
        in_specs=[vmem_spec] * 5,
        out_specs=vmem_spec,
        compiler_params=pltpu.CompilerParams(vmem_limit_bytes=32 * 1024 * 1024),
        cost_estimate=pl.CostEstimate(flops=flops, transcendentals=Cout,
                                      bytes_accessed=bytes_accessed),
    )(xflat, w_taps, gamma2d, beta2d, mask)

    # depth-to-space back to NCHW (cheap; the consumer requiring NCHW forces this one pass)
    o = out_sub.reshape(s, s, Cout, N, Hp, Wp)[:, :, :, :, :Qh, :Qw]
    return o.transpose(3, 2, 4, 0, 5, 1).reshape(N, Cout, Ho, Wo)


# ---------------- pure-JAX reference (silent correctness check) ----------------

def _reference(x, w, gamma, beta, s, p):
    Cin, Cout, k, _ = w.shape
    w_dir = jnp.flip(w, axis=(2, 3)).transpose(1, 0, 2, 3)   # (Cout, Cin, k, k)
    pad = k - 1 - p
    y = jax.lax.conv_general_dilated(
        x, w_dir, window_strides=(1, 1),
        padding=[(pad, pad), (pad, pad)],
        lhs_dilation=(s, s),
        dimension_numbers=("NCHW", "OIHW", "NCHW"))
    mean = y.mean(axis=(0, 2, 3), keepdims=True)
    var = ((y - mean) ** 2).mean(axis=(0, 2, 3), keepdims=True)
    yn = (y - mean) * jax.lax.rsqrt(var + EPS) * gamma.reshape(1, -1, 1, 1) \
         + beta.reshape(1, -1, 1, 1)
    return jnp.maximum(yn, 0.0)


if __name__ == "__main__":
    # Module hyper-params (in_planes=4, out_planes=8, kernel_size=4, stride=2, padding=1)
    N, Cin, Cout, H, W = 2, 4, 8, 8, 8
    ksize, stride, padding = 4, 2, 1

    key = jax.random.PRNGKey(0)
    k1, k2 = jax.random.split(key)
    x = jax.random.normal(k1, (N, Cin, H, W), jnp.float32)
    # ConvTranspose2d weight shape: (in_planes, out_planes, kH, kW), no bias
    w = jax.random.normal(k2, (Cin, Cout, ksize, ksize), jnp.float32) * 0.1
    # BatchNorm2d affine params at PyTorch init values (gamma=1, beta=0)
    gamma = jnp.ones((Cout,), jnp.float32)
    beta = jnp.zeros((Cout,), jnp.float32)

    fwd = jax.jit(conv2d_unit_forward, static_argnums=(4, 5))
    out = fwd(x, w, gamma, beta, stride, padding)
    out = jax.block_until_ready(out)

    ref = _reference(x, w, gamma, beta, stride, padding)
    assert out.shape == ref.shape == (N, Cout, 16, 16)
    assert float(jnp.max(jnp.abs(out - ref))) < 5e-2

    print("KERNEL_OK")
</pallas_src>

<mosaic_0001>
module attributes {stable_mosaic.version = 11 : i64} {
  func.func @kernel(%arg0: memref<4x256xbf16, #tpu.memory_space<vmem>>, %arg1: memref<4x4x8x4xbf16, #tpu.memory_space<vmem>>, %arg2: memref<8x1xf32, #tpu.memory_space<vmem>>, %arg3: memref<8x1xf32, #tpu.memory_space<vmem>>, %arg4: memref<1x200xf32, #tpu.memory_space<vmem>>, %arg5: memref<4x8x200xf32, #tpu.memory_space<vmem>>) attributes {dimension_semantics = [], scalar_prefetch = 0 : i64, scratch_operands = 0 : i64, tpu.core_type = #tpu.core_type<tc>} {
    %c0 = arith.constant 0 : index
    %c0_0 = arith.constant 0 : index
    %0 = vector.load %arg4[%c0, %c0_0] : memref<1x200xf32, #tpu.memory_space<vmem>>, vector<1x200xf32>
    %cst = arith.constant 0.000000e+00 : f32
    %1 = vector.broadcast %cst : f32 to vector<8x1xf32>
    %cst_1 = arith.constant 0.000000e+00 : f32
    %2 = vector.broadcast %cst_1 : f32 to vector<8x1xf32>
    %c0_2 = arith.constant 0 : index
    %c0_3 = arith.constant 0 : index
    %c0_4 = arith.constant 0 : index
    %c0_5 = arith.constant 0 : index
    %3 = vector.load %arg1[%c0_2, %c0_3, %c0_4, %c0_5] : memref<4x4x8x4xbf16, #tpu.memory_space<vmem>>, vector<1x1x8x4xbf16>
    %4 = vector.shape_cast %3 : vector<1x1x8x4xbf16> to vector<8x4xbf16>
    %c0_6 = arith.constant 0 : index
    %c11 = arith.constant 11 : index
    %5 = vector.load %arg0[%c0_6, %c11] : memref<4x256xbf16, #tpu.memory_space<vmem>>, vector<4x200xbf16>
    %cst_7 = arith.constant dense<0.000000e+00> : vector<8x200xf32>
    %6 = tpu.matmul %4, %5, %cst_7 {dimension_numbers = #tpu.dot_dimension_numbers<[1], [0], [0], [1], [0, 0, 1, 1], [], []>} : vector<8x4xbf16>, vector<4x200xbf16>, vector<8x200xf32> -> vector<8x200xf32>
    %c0_8 = arith.constant 0 : index
    %c1 = arith.constant 1 : index
    %c0_9 = arith.constant 0 : index
    %c0_10 = arith.constant 0 : index
    %7 = vector.load %arg1[%c0_8, %c1, %c0_9, %c0_10] : memref<4x4x8x4xbf16, #tpu.memory_space<vmem>>, vector<1x1x8x4xbf16>
    %8 = vector.shape_cast %7 : vector<1x1x8x4xbf16> to vector<8x4xbf16>
    %c0_11 = arith.constant 0 : index
    %c10 = arith.constant 10 : index
    %9 = vector.load %arg0[%c0_11, %c10] : memref<4x256xbf16, #tpu.memory_space<vmem>>, vector<4x200xbf16>
    %cst_12 = arith.constant dense<0.000000e+00> : vector<8x200xf32>
    %10 = tpu.matmul %8, %9, %cst_12 {dimension_numbers = #tpu.dot_dimension_numbers<[1], [0], [0], [1], [0, 0, 1, 1], [], []>} : vector<8x4xbf16>, vector<4x200xbf16>, vector<8x200xf32> -> vector<8x200xf32>
    %11 = arith.addf %6, %10 : vector<8x200xf32>
    %c0_13 = arith.constant 0 : index
    %c2 = arith.constant 2 : index
    %c0_14 = arith.constant 0 : index
    %c0_15 = arith.constant 0 : index
    %12 = vector.load %arg1[%c0_13, %c2, %c0_14, %c0_15] : memref<4x4x8x4xbf16, #tpu.memory_space<vmem>>, vector<1x1x8x4xbf16>
    %13 = vector.shape_cast %12 : vector<1x1x8x4xbf16> to vector<8x4xbf16>
    %c0_16 = arith.constant 0 : index
    %c1_17 = arith.constant 1 : index
    %14 = vector.load %arg0[%c0_16, %c1_17] : memref<4x256xbf16, #tpu.memory_space<vmem>>, vector<4x200xbf16>
    %cst_18 = arith.constant dense<0.000000e+00> : vector<8x200xf32>
    %15 = tpu.matmul %13, %14, %cst_18 {dimension_numbers = #tpu.dot_dimension_numbers<[1], [0], [0], [1], [0, 0, 1, 1], [], []>} : vector<8x4xbf16>, vector<4x200xbf16>, vector<8x200xf32> -> vector<8x200xf32>
    %16 = arith.addf %11, %15 : vector<8x200xf32>
    %c0_19 = arith.constant 0 : index
    %c3 = arith.constant 3 : index
    %c0_20 = arith.constant 0 : index
    %c0_21 = arith.constant 0 : index
    %17 = vector.load %arg1[%c0_19, %c3, %c0_20, %c0_21] : memref<4x4x8x4xbf16, #tpu.memory_space<vmem>>, vector<1x1x8x4xbf16>
    %18 = vector.shape_cast %17 : vector<1x1x8x4xbf16> to vector<8x4xbf16>
    %c0_22 = arith.constant 0 : index
    %c0_23 = arith.constant 0 : index
    %19 = vector.load %arg0[%c0_22, %c0_23] : memref<4x256xbf16, #tpu.memory_space<vmem>>, vector<4x200xbf16>
    %cst_24 = arith.constant dense<0.000000e+00> : vector<8x200xf32>
    %20 = tpu.matmul %18, %19, %cst_24 {dimension_numbers = #tpu.dot_dimension_numbers<[1], [0], [0], [1], [0, 0, 1, 1], [], []>} : vector<8x4xbf16>, vector<4x200xbf16>, vector<8x200xf32> -> vector<8x200xf32>
    %21 = arith.addf %16, %20 : vector<8x200xf32>
    %22 = vector.broadcast %0 : vector<1x200xf32> to vector<8x200xf32>
    %23 = arith.mulf %21, %22 : vector<8x200xf32>
    %c0_25 = arith.constant 0 : index
    %c0_26 = arith.constant 0 : index
    %c0_27 = arith.constant 0 : index
    %24 = vector.load %arg5[%c0_25, %c0_26, %c0_27] : memref<4x8x200xf32, #tpu.memory_space<vmem>>, vector<1x8x200xf32>
    %25 = vector.shape_cast %24 : vector<1x8x200xf32> to vector<8x200xf32>
    %26 = vector.shape_cast %23 : vector<8x200xf32> to vector<1x8x200xf32>
    tpu.vector_store %arg5[%c0_25, %c0_26, %c0_27], %26 {strides = array<i32>} : memref<4x8x200xf32, #tpu.memory_space<vmem>>, vector<1x8x200xf32>,
    %cst_28 = arith.constant dense<0.000000e+00> : vector<8xf32>
    %27 = vector.multi_reduction <add>, %23, %cst_28 [1] : vector<8x200xf32> to vector<8xf32>
    %28 = vector.shape_cast %27 : vector<8xf32> to vector<8x1xf32>
    %29 = arith.addf %1, %28 : vector<8x1xf32>
    %30 = arith.mulf %23, %23 : vector<8x200xf32>
    %cst_29 = arith.constant dense<0.000000e+00> : vector<8xf32>
    %31 = vector.multi_reduction <add>, %30, %cst_29 [1] : vector<8x200xf32> to vector<8xf32>
    %32 = vector.shape_cast %31 : vector<8xf32> to vector<8x1xf32>
    %33 = arith.addf %2, %32 : vector<8x1xf32>
    %c1_30 = arith.constant 1 : index
    %c0_31 = arith.constant 0 : index
    %c0_32 = arith.constant 0 : index
    %c0_33 = arith.constant 0 : index
    %34 = vector.load %arg1[%c1_30, %c0_31, %c0_32, %c0_33] : memref<4x4x8x4xbf16, #tpu.memory_space<vmem>>, vector<1x1x8x4xbf16>
    %35 = vector.shape_cast %34 : vector<1x1x8x4xbf16> to vector<8x4xbf16>
    %c0_34 = arith.constant 0 : index
    %c12 = arith.constant 12 : index
    %36 = vector.load %arg0[%c0_34, %c12] : memref<4x256xbf16, #tpu.memory_space<vmem>>, vector<4x200xbf16>
    %cst_35 = arith.constant dense<0.000000e+00> : vector<8x200xf32>
    %37 = tpu.matmul %35, %36, %cst_35 {dimension_numbers = #tpu.dot_dimension_numbers<[1], [0], [0], [1], [0, 0, 1, 1], [], []>} : vector<8x4xbf16>, vector<4x200xbf16>, vector<8x200xf32> -> vector<8x200xf32>
    %c1_36 = arith.constant 1 : index
    %c1_37 = arith.constant 1 : index
    %c0_38 = arith.constant 0 : index
    %c0_39 = arith.constant 0 : index
    %38 = vector.load %arg1[%c1_36, %c1_37, %c0_38, %c0_39] : memref<4x4x8x4xbf16, #tpu.memory_space<vmem>>, vector<1x1x8x4xbf16>
    %39 = vector.shape_cast %38 : vector<1x1x8x4xbf16> to vector<8x4xbf16>
    %c0_40 = arith.constant 0 : index
    %c11_41 = arith.constant 11 : index
    %40 = vector.load %arg0[%c0_40, %c11_41] : memref<4x256xbf16, #tpu.memory_space<vmem>>, vector<4x200xbf16>
    %cst_42 = arith.constant dense<0.000000e+00> : vector<8x200xf32>
    %41 = tpu.matmul %39, %40, %cst_42 {dimension_numbers = #tpu.dot_dimension_numbers<[1], [0], [0], [1], [0, 0, 1, 1], [], []>} : vector<8x4xbf16>, vector<4x200xbf16>, vector<8x200xf32> -> vector<8x200xf32>
    %42 = arith.addf %37, %41 : vector<8x200xf32>
    %c1_43 = arith.constant 1 : index
    %c2_44 = arith.constant 2 : index
    %c0_45 = arith.constant 0 : index
    %c0_46 = arith.constant 0 : index
    %43 = vector.load %arg1[%c1_43, %c2_44, %c0_45, %c0_46] : memref<4x4x8x4xbf16, #tpu.memory_space<vmem>>, vector<1x1x8x4xbf16>
    %44 = vector.shape_cast %43 : vector<1x1x8x4xbf16> to vector<8x4xbf16>
    %c0_47 = arith.constant 0 : index
    %c2_48 = arith.constant 2 : index
    %45 = vector.load %arg0[%c0_47, %c2_48] : memref<4x256xbf16, #tpu.memory_space<vmem>>, vector<4x200xbf16>
    %cst_49 = arith.constant dense<0.000000e+00> : vector<8x200xf32>
    %46 = tpu.matmul %44, %45, %cst_49 {dimension_numbers = #tpu.dot_dimension_numbers<[1], [0], [0], [1], [0, 0, 1, 1], [], []>} : vector<8x4xbf16>, vector<4x200xbf16>, vector<8x200xf32> -> vector<8x200xf32>
    %47 = arith.addf %42, %46 : vector<8x200xf32>
    %c1_50 = arith.constant 1 : index
    %c3_51 = arith.constant 3 : index
    %c0_52 = arith.constant 0 : index
    %c0_53 = arith.constant 0 : index
    %48 = vector.load %arg1[%c1_50, %c3_51, %c0_52, %c0_53] : memref<4x4x8x4xbf16, #tpu.memory_space<vmem>>, vector<1x1x8x4xbf16>
    %49 = vector.shape_cast %48 : vector<1x1x8x4xbf16> to vector<8x4xbf16>
    %c0_54 = arith.constant 0 : index
    %c1_55 = arith.constant 1 : index
    %50 = vector.load %arg0[%c0_54, %c1_55] : memref<4x256xbf16, #tpu.memory_space<vmem>>, vector<4x200xbf16>
    %cst_56 = arith.constant dense<0.000000e+00> : vector<8x200xf32>
    %51 = tpu.matmul %49, %50, %cst_56 {dimension_numbers = #tpu.dot_dimension_numbers<[1], [0], [0], [1], [0, 0, 1, 1], [], []>} : vector<8x4xbf16>, vector<4x200xbf16>, vector<8x200xf32> -> vector<8x200xf32>
    %52 = arith.addf %47, %51 : vector<8x200xf32>
    %53 = vector.broadcast %0 : vector<1x200xf32> to vector<8x200xf32>
    %54 = arith.mulf %52, %53 : vector<8x200xf32>
    %c1_57 = arith.constant 1 : index
    %c0_58 = arith.constant 0 : index
    %c0_59 = arith.constant 0 : index
    %55 = vector.load %arg5[%c1_57, %c0_58, %c0_59] : memref<4x8x200xf32, #tpu.memory_space<vmem>>, vector<1x8x200xf32>
    %56 = vector.shape_cast %55 : vector<1x8x200xf32> to vector<8x200xf32>
    %57 = vector.shape_cast %54 : vector<8x200xf32> to vector<1x8x200xf32>
    tpu.vector_store %arg5[%c1_57, %c0_58, %c0_59], %57 {strides = array<i32>} : memref<4x8x200xf32, #tpu.memory_space<vmem>>, vector<1x8x200xf32>,
    %cst_60 = arith.constant dense<0.000000e+00> : vector<8xf32>
    %58 = vector.multi_reduction <add>, %54, %cst_60 [1] : vector<8x200xf32> to vector<8xf32>
    %59 = vector.shape_cast %58 : vector<8xf32> to vector<8x1xf32>
    %60 = arith.addf %29, %59 : vector<8x1xf32>
    %61 = arith.mulf %54, %54 : vector<8x200xf32>
    %cst_61 = arith.constant dense<0.000000e+00> : vector<8xf32>
    %62 = vector.multi_reduction <add>, %61, %cst_61 [1] : vector<8x200xf32> to vector<8xf32>
    %63 = vector.shape_cast %62 : vector<8xf32> to vector<8x1xf32>
    %64 = arith.addf %33, %63 : vector<8x1xf32>
    %c2_62 = arith.constant 2 : index
    %c0_63 = arith.constant 0 : index
    %c0_64 = arith.constant 0 : index
    %c0_65 = arith.constant 0 : index
    %65 = vector.load %arg1[%c2_62, %c0_63, %c0_64, %c0_65] : memref<4x4x8x4xbf16, #tpu.memory_space<vmem>>, vector<1x1x8x4xbf16>
    %66 = vector.shape_cast %65 : vector<1x1x8x4xbf16> to vector<8x4xbf16>
    %c0_66 = arith.constant 0 : index
    %c21 = arith.constant 21 : index
    %67 = vector.load %arg0[%c0_66, %c21] : memref<4x256xbf16, #tpu.memory_space<vmem>>, vector<4x200xbf16>
    %cst_67 = arith.constant dense<0.000000e+00> : vector<8x200xf32>
    %68 = tpu.matmul %66, %67, %cst_67 {dimension_numbers = #tpu.dot_dimension_numbers<[1], [0], [0], [1], [0, 0, 1, 1], [], []>} : vector<8x4xbf16>, vector<4x200xbf16>, vector<8x200xf32> -> vector<8x200xf32>
    %c2_68 = arith.constant 2 : index
    %c1_69 = arith.constant 1 : index
    %c0_70 = arith.constant 0 : index
    %c0_71 = arith.constant 0 : index
    %69 = vector.load %arg1[%c2_68, %c1_69, %c0_70, %c0_71] : memref<4x4x8x4xbf16, #tpu.memory_space<vmem>>, vector<1x1x8x4xbf16>
    %70 = vector.shape_cast %69 : vector<1x1x8x4xbf16> to vector<8x4xbf16>
    %c0_72 = arith.constant 0 : index
    %c20 = arith.constant 20 : index
    %71 = vector.load %arg0[%c0_72, %c20] : memref<4x256xbf16, #tpu.memory_space<vmem>>, vector<4x200xbf16>
    %cst_73 = arith.constant dense<0.000000e+00> : vector<8x200xf32>
    %72 = tpu.matmul %70, %71, %cst_73 {dimension_numbers = #tpu.dot_dimension_numbers<[1], [0], [0], [1], [0, 0, 1, 1], [], []>} : vector<8x4xbf16>, vector<4x200xbf16>, vector<8x200xf32> -> vector<8x200xf32>
    %73 = arith.addf %68, %72 : vector<8x200xf32>
    %c2_74 = arith.constant 2 : index
    %c2_75 = arith.constant 2 : index
    %c0_76 = arith.constant 0 : index
    %c0_77 = arith.constant 0 : index
    %74 = vector.load %arg1[%c2_74, %c2_75, %c0_76, %c0_77] : memref<4x4x8x4xbf16, #tpu.memory_space<vmem>>, vector<1x1x8x4xbf16>
    %75 = vector.shape_cast %74 : vector<1x1x8x4xbf16> to vector<8x4xbf16>
    %c0_78 = arith.constant 0 : index
    %c11_79 = arith.constant 11 : index
    %76 = vector.load %arg0[%c0_78, %c11_79] : memref<4x256xbf16, #tpu.memory_space<vmem>>, vector<4x200xbf16>
    %cst_80 = arith.constant dense<0.000000e+00> : vector<8x200xf32>
    %77 = tpu.matmul %75, %76, %cst_80 {dimension_numbers = #tpu.dot_dimension_numbers<[1], [0], [0], [1], [0, 0, 1, 1], [], []>} : vector<8x4xbf16>, vector<4x200xbf16>, vector<8x200xf32> -> vector<8x200xf32>
    %78 = arith.addf %73, %77 : vector<8x200xf32>
    %c2_81 = arith.constant 2 : index
    %c3_82 = arith.constant 3 : index
    %c0_83 = arith.constant 0 : index
    %c0_84 = arith.constant 0 : index
    %79 = vector.load %arg1[%c2_81, %c3_82, %c0_83, %c0_84] : memref<4x4x8x4xbf16, #tpu.memory_space<vmem>>, vector<1x1x8x4xbf16>
    %80 = vector.shape_cast %79 : vector<1x1x8x4xbf16> to vector<8x4xbf16>
    %c0_85 = arith.constant 0 : index
    %c10_86 = arith.constant 10 : index
    %81 = vector.load %arg0[%c0_85, %c10_86] : memref<4x256xbf16, #tpu.memory_space<vmem>>, vector<4x200xbf16>
    %cst_87 = arith.constant dense<0.000000e+00> : vector<8x200xf32>
    %82 = tpu.matmul %80, %81, %cst_87 {dimension_numbers = #tpu.dot_dimension_numbers<[1], [0], [0], [1], [0, 0, 1, 1], [], []>} : vector<8x4xbf16>, vector<4x200xbf16>, vector<8x200xf32> -> vector<8x200xf32>
    %83 = arith.addf %78, %82 : vector<8x200xf32>
    %84 = vector.broadcast %0 : vector<1x200xf32> to vector<8x200xf32>
    %85 = arith.mulf %83, %84 : vector<8x200xf32>
    %c2_88 = arith.constant 2 : index
    %c0_89 = arith.constant 0 : index
    %c0_90 = arith.constant 0 : index
    %86 = vector.load %arg5[%c2_88, %c0_89, %c0_90] : memref<4x8x200xf32, #tpu.memory_space<vmem>>, vector<1x8x200xf32>
    %87 = vector.shape_cast %86 : vector<1x8x200xf32> to vector<8x200xf32>
    %88 = vector.shape_cast %85 : vector<8x200xf32> to vector<1x8x200xf32>
    tpu.vector_store %arg5[%c2_88, %c0_89, %c0_90], %88 {strides = array<i32>} : memref<4x8x200xf32, #tpu.memory_space<vmem>>, vector<1x8x200xf32>,
    %cst_91 = arith.constant dense<0.000000e+00> : vector<8xf32>
    %89 = vector.multi_reduction <add>, %85, %cst_91 [1] : vector<8x200xf32> to vector<8xf32>
    %90 = vector.shape_cast %89 : vector<8xf32> to vector<8x1xf32>
    %91 = arith.addf %60, %90 : vector<8x1xf32>
    %92 = arith.mulf %85, %85 : vector<8x200xf32>
    %cst_92 = arith.constant dense<0.000000e+00> : vector<8xf32>
    %93 = vector.multi_reduction <add>, %92, %cst_92 [1] : vector<8x200xf32> to vector<8xf32>
    %94 = vector.shape_cast %93 : vector<8xf32> to vector<8x1xf32>
    %95 = arith.addf %64, %94 : vector<8x1xf32>
    %c3_93 = arith.constant 3 : index
    %c0_94 = arith.constant 0 : index
    %c0_95 = arith.constant 0 : index
    %c0_96 = arith.constant 0 : index
    %96 = vector.load %arg1[%c3_93, %c0_94, %c0_95, %c0_96] : memref<4x4x8x4xbf16, #tpu.memory_space<vmem>>, vector<1x1x8x4xbf16>
    %97 = vector.shape_cast %96 : vector<1x1x8x4xbf16> to vector<8x4xbf16>
    %c0_97 = arith.constant 0 : index
    %c22 = arith.constant 22 : index
    %98 = vector.load %arg0[%c0_97, %c22] : memref<4x256xbf16, #tpu.memory_space<vmem>>, vector<4x200xbf16>
    %cst_98 = arith.constant dense<0.000000e+00> : vector<8x200xf32>
    %99 = tpu.matmul %97, %98, %cst_98 {dimension_numbers = #tpu.dot_dimension_numbers<[1], [0], [0], [1], [0, 0, 1, 1], [], []>} : vector<8x4xbf16>, vector<4x200xbf16>, vector<8x200xf32> -> vector<8x200xf32>
    %c3_99 = arith.constant 3 : index
    %c1_100 = arith.constant 1 : index
    %c0_101 = arith.constant 0 : index
    %c0_102 = arith.constant 0 : index
    %100 = vector.load %arg1[%c3_99, %c1_100, %c0_101, %c0_102] : memref<4x4x8x4xbf16, #tpu.memory_space<vmem>>, vector<1x1x8x4xbf16>
    %101 = vector.shape_cast %100 : vector<1x1x8x4xbf16> to vector<8x4xbf16>
    %c0_103 = arith.constant 0 : index
    %c21_104 = arith.constant 21 : index
    %102 = vector.load %arg0[%c0_103, %c21_104] : memref<4x256xbf16, #tpu.memory_space<vmem>>, vector<4x200xbf16>
    %cst_105 = arith.constant dense<0.000000e+00> : vector<8x200xf32>
    %103 = tpu.matmul %101, %102, %cst_105 {dimension_numbers = #tpu.dot_dimension_numbers<[1], [0], [0], [1], [0, 0, 1, 1], [], []>} : vector<8x4xbf16>, vector<4x200xbf16>, vector<8x200xf32> -> vector<8x200xf32>
    %104 = arith.addf %99, %103 : vector<8x200xf32>
    %c3_106 = arith.constant 3 : index
    %c2_107 = arith.constant 2 : index
    %c0_108 = arith.constant 0 : index
    %c0_109 = arith.constant 0 : index
    %105 = vector.load %arg1[%c3_106, %c2_107, %c0_108, %c0_109] : memref<4x4x8x4xbf16, #tpu.memory_space<vmem>>, vector<1x1x8x4xbf16>
    %106 = vector.shape_cast %105 : vector<1x1x8x4xbf16> to vector<8x4xbf16>
    %c0_110 = arith.constant 0 : index
    %c12_111 = arith.constant 12 : index
    %107 = vector.load %arg0[%c0_110, %c12_111] : memref<4x256xbf16, #tpu.memory_space<vmem>>, vector<4x200xbf16>
    %cst_112 = arith.constant dense<0.000000e+00> : vector<8x200xf32>
    %108 = tpu.matmul %106, %107, %cst_112 {dimension_numbers = #tpu.dot_dimension_numbers<[1], [0], [0], [1], [0, 0, 1, 1], [], []>} : vector<8x4xbf16>, vector<4x200xbf16>, vector<8x200xf32> -> vector<8x200xf32>
    %109 = arith.addf %104, %108 : vector<8x200xf32>
    %c3_113 = arith.constant 3 : index
    %c3_114 = arith.constant 3 : index
    %c0_115 = arith.constant 0 : index
    %c0_116 = arith.constant 0 : index
    %110 = vector.load %arg1[%c3_113, %c3_114, %c0_115, %c0_116] : memref<4x4x8x4xbf16, #tpu.memory_space<vmem>>, vector<1x1x8x4xbf16>
    %111 = vector.shape_cast %110 : vector<1x1x8x4xbf16> to vector<8x4xbf16>
    %c0_117 = arith.constant 0 : index
    %c11_118 = arith.constant 11 : index
    %112 = vector.load %arg0[%c0_117, %c11_118] : memref<4x256xbf16, #tpu.memory_space<vmem>>, vector<4x200xbf16>
    %cst_119 = arith.constant dense<0.000000e+00> : vector<8x200xf32>
    %113 = tpu.matmul %111, %112, %cst_119 {dimension_numbers = #tpu.dot_dimension_numbers<[1], [0], [0], [1], [0, 0, 1, 1], [], []>} : vector<8x4xbf16>, vector<4x200xbf16>, vector<8x200xf32> -> vector<8x200xf32>
    %114 = arith.addf %109, %113 : vector<8x200xf32>
    %115 = vector.broadcast %0 : vector<1x200xf32> to vector<8x200xf32>
    %116 = arith.mulf %114, %115 : vector<8x200xf32>
    %c3_120 = arith.constant 3 : index
    %c0_121 = arith.constant 0 : index
    %c0_122 = arith.constant 0 : index
    %117 = vector.load %arg5[%c3_120, %c0_121, %c0_122] : memref<4x8x200xf32, #tpu.memory_space<vmem>>, vector<1x8x200xf32>
    %118 = vector.shape_cast %117 : vector<1x8x200xf32> to vector<8x200xf32>
    %119 = vector.shape_cast %116 : vector<8x200xf32> to vector<1x8x200xf32>
    tpu.vector_store %arg5[%c3_120, %c0_121, %c0_122], %119 {strides = array<i32>} : memref<4x8x200xf32, #tpu.memory_space<vmem>>, vector<1x8x200xf32>,
    %cst_123 = arith.constant dense<0.000000e+00> : vector<8xf32>
    %120 = vector.multi_reduction <add>, %116, %cst_123 [1] : vector<8x200xf32> to vector<8xf32>
    %121 = vector.shape_cast %120 : vector<8xf32> to vector<8x1xf32>
    %122 = arith.addf %91, %121 : vector<8x1xf32>
    %123 = arith.mulf %116, %116 : vector<8x200xf32>
    %cst_124 = arith.constant dense<0.000000e+00> : vector<8xf32>
    %124 = vector.multi_reduction <add>, %123, %cst_124 [1] : vector<8x200xf32> to vector<8xf32>
    %125 = vector.shape_cast %124 : vector<8xf32> to vector<8x1xf32>
    %126 = arith.addf %95, %125 : vector<8x1xf32>
    %cst_125 = arith.constant 0.001953125 : f32
    %127 = vector.broadcast %cst_125 : f32 to vector<8x1xf32>
    %128 = arith.mulf %122, %127 : vector<8x1xf32>
    %cst_126 = arith.constant 0.001953125 : f32
    %129 = vector.broadcast %cst_126 : f32 to vector<8x1xf32>
    %130 = arith.mulf %126, %129 : vector<8x1xf32>
    %131 = arith.mulf %128, %128 : vector<8x1xf32>
    %132 = arith.subf %130, %131 : vector<8x1xf32>
    %c0_127 = arith.constant 0 : index
    %c0_128 = arith.constant 0 : index
    %133 = vector.load %arg2[%c0_127, %c0_128] : memref<8x1xf32, #tpu.memory_space<vmem>>, vector<8x1xf32>
    %cst_129 = arith.constant 1.000000e-03 : f32
    %134 = vector.broadcast %cst_129 : f32 to vector<8x1xf32>
    %135 = arith.addf %132, %134 : vector<8x1xf32>
    %136 = math.rsqrt %135 : vector<8x1xf32>
    %137 = arith.mulf %133, %136 : vector<8x1xf32>
    %c0_130 = arith.constant 0 : index
    %c0_131 = arith.constant 0 : index
    %138 = vector.load %arg3[%c0_130, %c0_131] : memref<8x1xf32, #tpu.memory_space<vmem>>, vector<8x1xf32>
    %139 = arith.mulf %128, %137 : vector<8x1xf32>
    %140 = arith.subf %138, %139 : vector<8x1xf32>
    %c0_132 = arith.constant 0 : index
    %c0_133 = arith.constant 0 : index
    %c0_134 = arith.constant 0 : index
    %141 = vector.load %arg5[%c0_132, %c0_133, %c0_134] : memref<4x8x200xf32, #tpu.memory_space<vmem>>, vector<1x8x200xf32>
    %142 = vector.shape_cast %141 : vector<1x8x200xf32> to vector<8x200xf32>
    %143 = vector.broadcast %137 : vector<8x1xf32> to vector<8x200xf32>
    %144 = arith.mulf %142, %143 : vector<8x200xf32>
    %145 = vector.broadcast %140 : vector<8x1xf32> to vector<8x200xf32>
    %146 = arith.addf %144, %145 : vector<8x200xf32>
    %cst_135 = arith.constant 0.000000e+00 : f32
    %147 = vector.broadcast %cst_135 : f32 to vector<8x200xf32>
    %148 = arith.maximumf %146, %147 : vector<8x200xf32>
    %c0_136 = arith.constant 0 : index
    %c0_137 = arith.constant 0 : index
    %c0_138 = arith.constant 0 : index
    %149 = vector.load %arg5[%c0_136, %c0_137, %c0_138] : memref<4x8x200xf32, #tpu.memory_space<vmem>>, vector<1x8x200xf32>
    %150 = vector.shape_cast %149 : vector<1x8x200xf32> to vector<8x200xf32>
    %151 = vector.shape_cast %148 : vector<8x200xf32> to vector<1x8x200xf32>
    tpu.vector_store %arg5[%c0_136, %c0_137, %c0_138], %151 {strides = array<i32>} : memref<4x8x200xf32, #tpu.memory_space<vmem>>, vector<1x8x200xf32>,
    %c1_139 = arith.constant 1 : index
    %c0_140 = arith.constant 0 : index
    %c0_141 = arith.constant 0 : index
    %152 = vector.load %arg5[%c1_139, %c0_140, %c0_141] : memref<4x8x200xf32, #tpu.memory_space<vmem>>, vector<1x8x200xf32>
    %153 = vector.shape_cast %152 : vector<1x8x200xf32> to vector<8x200xf32>
    %154 = vector.broadcast %137 : vector<8x1xf32> to vector<8x200xf32>
    %155 = arith.mulf %153, %154 : vector<8x200xf32>
    %156 = vector.broadcast %140 : vector<8x1xf32> to vector<8x200xf32>
    %157 = arith.addf %155, %156 : vector<8x200xf32>
    %cst_142 = arith.constant 0.000000e+00 : f32
    %158 = vector.broadcast %cst_142 : f32 to vector<8x200xf32>
    %159 = arith.maximumf %157, %158 : vector<8x200xf32>
    %c1_143 = arith.constant 1 : index
    %c0_144 = arith.constant 0 : index
    %c0_145 = arith.constant 0 : index
    %160 = vector.load %arg5[%c1_143, %c0_144, %c0_145] : memref<4x8x200xf32, #tpu.memory_space<vmem>>, vector<1x8x200xf32>
    %161 = vector.shape_cast %160 : vector<1x8x200xf32> to vector<8x200xf32>
    %162 = vector.shape_cast %159 : vector<8x200xf32> to vector<1x8x200xf32>
    tpu.vector_store %arg5[%c1_143, %c0_144, %c0_145], %162 {strides = array<i32>} : memref<4x8x200xf32, #tpu.memory_space<vmem>>, vector<1x8x200xf32>,
    %c2_146 = arith.constant 2 : index
    %c0_147 = arith.constant 0 : index
    %c0_148 = arith.constant 0 : index
    %163 = vector.load %arg5[%c2_146, %c0_147, %c0_148] : memref<4x8x200xf32, #tpu.memory_space<vmem>>, vector<1x8x200xf32>
    %164 = vector.shape_cast %163 : vector<1x8x200xf32> to vector<8x200xf32>
    %165 = vector.broadcast %137 : vector<8x1xf32> to vector<8x200xf32>
    %166 = arith.mulf %164, %165 : vector<8x200xf32>
    %167 = vector.broadcast %140 : vector<8x1xf32> to vector<8x200xf32>
    %168 = arith.addf %166, %167 : vector<8x200xf32>
    %cst_149 = arith.constant 0.000000e+00 : f32
    %169 = vector.broadcast %cst_149 : f32 to vector<8x200xf32>
    %170 = arith.maximumf %168, %169 : vector<8x200xf32>
    %c2_150 = arith.constant 2 : index
    %c0_151 = arith.constant 0 : index
    %c0_152 = arith.constant 0 : index
    %171 = vector.load %arg5[%c2_150, %c0_151, %c0_152] : memref<4x8x200xf32, #tpu.memory_space<vmem>>, vector<1x8x200xf32>
    %172 = vector.shape_cast %171 : vector<1x8x200xf32> to vector<8x200xf32>
    %173 = vector.shape_cast %170 : vector<8x200xf32> to vector<1x8x200xf32>
    tpu.vector_store %arg5[%c2_150, %c0_151, %c0_152], %173 {strides = array<i32>} : memref<4x8x200xf32, #tpu.memory_space<vmem>>, vector<1x8x200xf32>,
    %c3_153 = arith.constant 3 : index
    %c0_154 = arith.constant 0 : index
    %c0_155 = arith.constant 0 : index
    %174 = vector.load %arg5[%c3_153, %c0_154, %c0_155] : memref<4x8x200xf32, #tpu.memory_space<vmem>>, vector<1x8x200xf32>
    %175 = vector.shape_cast %174 : vector<1x8x200xf32> to vector<8x200xf32>
    %176 = vector.broadcast %137 : vector<8x1xf32> to vector<8x200xf32>
    %177 = arith.mulf %175, %176 : vector<8x200xf32>
    %178 = vector.broadcast %140 : vector<8x1xf32> to vector<8x200xf32>
    %179 = arith.addf %177, %178 : vector<8x200xf32>
    %cst_156 = arith.constant 0.000000e+00 : f32
    %180 = vector.broadcast %cst_156 : f32 to vector<8x200xf32>
    %181 = arith.maximumf %179, %180 : vector<8x200xf32>
    %c3_157 = arith.constant 3 : index
    %c0_158 = arith.constant 0 : index
    %c0_159 = arith.constant 0 : index
    %182 = vector.load %arg5[%c3_157, %c0_158, %c0_159] : memref<4x8x200xf32, #tpu.memory_space<vmem>>, vector<1x8x200xf32>
    %183 = vector.shape_cast %182 : vector<1x8x200xf32> to vector<8x200xf32>
    %184 = vector.shape_cast %181 : vector<8x200xf32> to vector<1x8x200xf32>
    tpu.vector_store %arg5[%c3_157, %c0_158, %c0_159], %184 {strides = array<i32>} : memref<4x8x200xf32, #tpu.memory_space<vmem>>, vector<1x8x200xf32>,
    return
  }
}

</mosaic_0001>

<bundles_post_ra>
// kernel: conv2d_unit_forward.1
= control target key start
LH: loop header
LB: loop body
LE: loop exit
PB: predicated region body
PF: predicated region fallthrough
CT: control target
= control target key end

     0   :  { %v1356_v1 = vmov 0   ;;  %s1357_s20 = smov 117   ;;  %s1358_s21 = smov 118   ;;  %vm45_vm0 = vcmask 1041408   ;;  %vm39_vm1 = vcmask 965632   ;;  %vm97_vm2 = vcmask 957440   ;;  %s1665_s0 = inlined_call_operand.vmem [shape: bf16[4,256], index: 0, kind: input, shape index: {}]   ;;  %s1666_s1 = inlined_call_operand.vmem [shape: bf16[4,4,8,4], index: 1, kind: input, shape index: {}]   ;;  %s1667_s4 = inlined_call_operand.vmem [shape: f32[1,200], index: 4, kind: input, shape index: {}]   ;;  %s1668_s5 = inlined_call_operand.vmem [shape: f32[4,8,200], index: 5, kind: output, shape index: {}]   ;;  %s1669_s2 = inlined_call_operand.vmem [shape: f32[8,1], index: 2, kind: input, shape index: {}]   ;;  %s1670_s3 = inlined_call_operand.vmem [shape: f32[8,1], index: 3, kind: input, shape index: {}]  }
   0x1   :  { %v1398_v0 = vld.sshfl [vmem:[%s1665_s0] sm:$0x33 pattern:$0x76325410]  ;;  %84 = vmatprep.mubr.bf16.mxu0 %v1356_v1  ;;  %371 = vmatprep.mubr.bf16.mxu1 %v1356_v1  ;;  %s1359_s0 = smov 116   ;;  %s1360_s22 = smov 127  }
   0x2   :  { %325 = vrot.lane.b32.xlu1 %v1398_v0, %s1357_s20  ;;  %35 = vrot.lane.b32.xlu0 %v1398_v0, %s1358_s21  ;;  %v1408_v2 = vcombine.high %v1398_v0, %v1398_v0  ;;  %s1361_s23 = smov 126   ;;  %s1362_s24 = smov 108   ;;  %v1218_v11 = vld [vmem:[%s1666_s1 + $0x4] sm:$0xf]  ;;  %vm41_vm3 = vcmask 31744   ;;  %vm384_vm4 = vcmask 949248  }
   0x3   :  { %1352 = vset.pattern.permute.xlu1 %v1356_v1  ;;  %1353 = vset.pattern.permute.xlu0 %v1356_v1  ;;  %s1363_s25 = smov 107   ;;  %s1364_s26 = smov 106   ;;  %v1233_v12 = vld [vmem:[%s1666_s1 + $0x14] sm:$0xf]  ;;  %vm165_vm5 = vcmask 1039360   ;;  %vm452_vm6 = vcmask 1031168  }
   0x4   :  { %v22_v24 = vld [vmem:[%s1666_s1] sm:$0xf]  ;;  %v1232_v25 = vld [vmem:[%s1666_s1 + $0x10] sm:$0xf]  ;;  %v1224_v36 = vld [vmem:[%s1666_s1 + $0x8] sm:$0xf] }
   0x5   :  { %v1239_v37 = vld [vmem:[%s1666_s1 + $0x18] sm:$0xf]  ;;  %v235_v38 = vsel %vm45_vm0, %v1398_v0, 0  ;;  %vm610_vm7 = vcmask 883712   ;;  %vm666_vm8 = vcmask 875520   ;;  %vm946_vm9 = vcmask 867328  }
   0x6   :  { %327 = vrot.lane.b32.xlu1 %v1408_v2, %s1357_s20  ;;  %37 = vrot.lane.b32.xlu0 %v1408_v2, %s1358_s21  ;;  %v1228_v46 = vld [vmem:[%s1666_s1 + $0xc] sm:$0xf]  ;;  %v1243_v47 = vld [vmem:[%s1666_s1 + $0x1c] sm:$0xf]  ;;  %vm297_vm10 = vcmask 588800  }
   0x7   :  { %v1250_v55 = vld [vmem:[%s1666_s1 + $0x24] sm:$0xf]  ;;  %v1267_v56 = vld [vmem:[%s1666_s1 + $0x34] sm:$0xf] }
   0xa   :  { %95 = vrot.lane.b32.xlu1 %v1408_v2, %s1357_s20  ;;  %93 = vrot.lane.b32.xlu0 %v1398_v0, %s1357_s20 }
   0xe   :  { %382 = vrot.lane.b32.xlu1 %v1408_v2, %s1359_s0  ;;  %380 = vrot.lane.b32.xlu0 %v1398_v0, %s1359_s0 }
  0x12   :  { %163 = vrot.lane.b32.xlu1 %v1408_v2, %s1360_s22  ;;  %161 = vrot.lane.b32.xlu0 %v1398_v0, %s1360_s22 }
  0x16   :  { %450 = vrot.lane.b32.xlu1 %v1408_v2, %s1361_s23  ;;  %448 = vrot.lane.b32.xlu0 %v1398_v0, %s1361_s23 }
  0x1a   :  { %520 = vrot.lane.b32.xlu1 %v1408_v2, %s1360_s22  ;;  %518 = vrot.lane.b32.xlu0 %v1398_v0, %s1360_s22 }
  0x1e   :  { %608 = vrot.lane.b32.xlu1 %v1408_v2, %s1362_s24  ;;  %606 = vrot.lane.b32.xlu0 %v1398_v0, %s1362_s24 }
  0x22   :  { %889 = vrot.lane.b32.xlu1 %v1408_v2, %s1363_s25  ;;  %887 = vrot.lane.b32.xlu0 %v1398_v0, %s1363_s25 }
  0x26   :  { %664 = vrot.lane.b32.xlu1 %v1408_v2, %s1363_s25  ;;  %662 = vrot.lane.b32.xlu0 %v1398_v0, %s1363_s25 }
  0x2a   :  { %944 = vrot.lane.b32.xlu1 %v1408_v2, %s1364_s26  ;;  %942 = vrot.lane.b32.xlu0 %v1398_v0, %s1364_s26 }
  0x2e   :  { %732 = vrot.lane.b32.xlu1 %v1408_v2, %s1357_s20  ;;  %730 = vrot.lane.b32.xlu0 %v1398_v0, %s1357_s20 }
  0x32   :  { %1012 = vrot.lane.b32.xlu1 %v1408_v2, %s1359_s0  ;;  %1010 = vrot.lane.b32.xlu0 %v1398_v0, %s1359_s0 }
  0x36   :  { %801 = vrot.lane.b32.xlu1 %v1408_v2, %s1358_s21  ;;  %799 = vrot.lane.b32.xlu0 %v1398_v0, %s1358_s21 }
  0x3a   :  { %1081 = vrot.lane.b32.xlu1 %v1408_v2, %s1357_s20  ;;  %1079 = vrot.lane.b32.xlu0 %v1398_v0, %s1357_s20 }
  0x74   :  { %v326_v3 = vpop.permute.xlu1 %325  ;;  %v36_v4 = vpop.permute.xlu0 %35 }
  0x78   :  { %v328_v5 = vpop.permute.xlu1 %327  ;;  %v38_v6 = vpop.permute.xlu0 %37 }
  0x79   :  { %1220 = vmatprep.subr.msk.bf16.mxu0 %vm45_vm0, %v38_v6  ;;  %1235 = vmatprep.subr.msk.bf16.mxu1 %vm45_vm0, %v328_v5  ;;  %v40_v7 = vsel %vm39_vm1, %v36_v4, %v38_v6  ;;  %v329_v8 = vsel %vm97_vm2, %v326_v3, %v328_v5  ;;  %v1266_v3 = vld [vmem:[%s1666_s1 + $0x30] sm:$0xf] }
  0x7a   :  { %v47_v9 = vsel %vm45_vm0, %v40_v7, 0  ;;  %v334_v10 = vsel %vm45_vm0, %v329_v8, 0 }
  0x7b   :  { %53 = vmatpush1.bf16.msra.mxu0 %v47_v9  ;;  %340 = vmatpush1.bf16.msra.mxu1 %v334_v10 }
  0x7c   :  { %v96_v13 = vpop.permute.xlu1 %95  ;;  %v94_v14 = vpop.permute.xlu0 %93 }
  0x7d   :  { %v98_v15 = vsel %vm97_vm2, %v94_v14, %v96_v13  ;;  %1222 = vmatprep.subr.msk.bf16.mxu0 %vm45_vm0, %v96_v13 }
  0x7e   :  { %v103_v16 = vsel %vm45_vm0, %v98_v15, 0  ;;  %1221 = vmatmul.mubr.msk.bf16.vlgmr.msra.gmra.mrb[0].mxu0 %vm41_vm3, %v1218_v11  ;;  %1236 = vmatmul.mubr.msk.bf16.vlgmr.msra.gmra.mrb[0].mxu1 %vm41_vm3, %v1233_v12  ;;  %v1256_v11 = vld [vmem:[%s1666_s1 + $0x28] sm:$0xf]  ;;  %v1273_v12 = vld [vmem:[%s1666_s1 + $0x38] sm:$0xf] }
  0x7f   :  { %109 = vmatpush1.bf16.msra.mxu0 %v103_v16  ;;  %140 = vmatprep.mubr.bf16.mxu0 %v1356_v1  ;;  %v1260_v15 = vld [vmem:[%s1666_s1 + $0x2c] sm:$0xf]  ;;  %v1277_v16 = vld [vmem:[%s1666_s1 + $0x3c] sm:$0xf] }
  0x80   :  { %v383_v17 = vpop.permute.xlu1 %382  ;;  %v381_v18 = vpop.permute.xlu0 %380  ;;  %427 = vmatprep.mubr.bf16.mxu1 %v1356_v1 }
  0x81   :  { %v385_v19 = vsel %vm384_vm4, %v381_v18, %v383_v17  ;;  %1237 = vmatprep.subr.msk.bf16.mxu1 %vm45_vm0, %v383_v17  ;;  %v284_v17 = vlaneseq }
  0x82   :  { %v390_v20 = vsel %vm45_vm0, %v385_v19, 0 }
  0x83   :  { %396 = vmatpush1.bf16.msra.mxu1 %v390_v20  ;;  %v285_v18 = vshrl.u32 %v284_v17, 7  ;;  %v21_v20 = vld [vmem:[%s1667_s4] sm:$0x3] }
  0x84   :  { %v164_v21 = vpop.permute.xlu1 %163  ;;  %v162_v22 = vpop.permute.xlu0 %161 }
  0x85   :  { %v166_v23 = vsel %vm165_vm5, %v162_v22, %v164_v21  ;;  %1226 = vmatprep.subr.msk.bf16.mxu0 %vm45_vm0, %v164_v21  ;;  %v290_v19 = vsub.s32 1, %v285_v18 }
  0x86   :  { %v171_v26 = vsel %vm45_vm0, %v166_v23, 0 }
  0x87   :  { %v291_v21 = vrot.slane %v21_v20, %v290_v19 }
  0x88   :  { %v451_v27 = vpop.permute.xlu1 %450  ;;  %v449_v28 = vpop.permute.xlu0 %448 }
  0x89   :  { %v453_v29 = vsel %vm452_vm6, %v449_v28, %v451_v27  ;;  %1241 = vmatprep.subr.msk.bf16.mxu1 %vm45_vm0, %v451_v27 }
  0x8a   :  { %1223 = vmatmul.mubr.msk.bf16.vlgmr.msra.gmra.mrb[0].mxu0 %vm41_vm3, %v22_v24  ;;  %1238 = vmatmul.mubr.msk.bf16.vlgmr.msra.gmra.mrb[0].mxu1 %vm41_vm3, %v1232_v25  ;;  %v458_v30 = vsel %vm45_vm0, %v453_v29, 0 }
  0x8b   :  { %177 = vmatpush1.bf16.msra.mxu0 %v171_v26  ;;  %464 = vmatpush1.bf16.msra.mxu1 %v458_v30 }
  0x8c   :  { %208 = vmatprep.mubr.bf16.mxu0 %v1356_v1  ;;  %495 = vmatprep.mubr.bf16.mxu1 %v1356_v1  ;;  %v521_v31 = vpop.permute.xlu1 %520  ;;  %v519_v32 = vpop.permute.xlu0 %518 }
  0x8d   :  { %1230 = vmatprep.subr.msk.bf16.mxu0 %vm45_vm0, %v1408_v2  ;;  %1245 = vmatprep.subr.msk.bf16.mxu1 %vm45_vm0, %v521_v31  ;;  %v522_v34 = vsel %vm165_vm5, %v519_v32, %v521_v31  ;;  %v1249_v2 = vld [vmem:[%s1666_s1 + $0x20] sm:$0xf] }
  0x8e   :  { %v527_v39 = vsel %vm45_vm0, %v522_v34, 0 }
  0x90   :  { %v609_v33 = vpop.permute.xlu1 %608  ;;  %v607_v35 = vpop.permute.xlu0 %606 }
  0x91   :  { %v611_v44 = vsel %vm610_vm7, %v607_v35, %v609_v33 }
  0x92   :  { %v616_v48 = vsel %vm45_vm0, %v611_v44, 0 }
  0x94   :  { %v890_v40 = vpop.permute.xlu1 %889  ;;  %v888_v41 = vpop.permute.xlu0 %887 }
  0x95   :  { %v891_v45 = vsel %vm666_vm8, %v888_v41, %v890_v40 }
  0x96   :  { %1227 = vmatmul.mubr.msk.bf16.vlgmr.msra.gmra.mrb[0].mxu0 %vm41_vm3, %v1224_v36  ;;  %1242 = vmatmul.mubr.msk.bf16.vlgmr.msra.gmra.mrb[0].mxu1 %vm41_vm3, %v1239_v37  ;;  %v896_v49 = vsel %vm45_vm0, %v891_v45, 0 }
  0x97   :  { %241 = vmatpush1.bf16.msra.mxu0 %v235_v38  ;;  %533 = vmatpush1.bf16.msra.mxu1 %v527_v39 }
  0x98   :  { %272 = vmatprep.mubr.bf16.mxu0 %v1356_v1  ;;  %564 = vmatprep.mubr.bf16.mxu1 %v1356_v1  ;;  %v665_v42 = vpop.permute.xlu1 %664  ;;  %v663_v43 = vpop.permute.xlu0 %662 }
  0x99   :  { %1252 = vmatprep.subr.msk.bf16.mxu0 %vm45_vm0, %v609_v33  ;;  %1269 = vmatprep.subr.msk.bf16.mxu1 %vm45_vm0, %v890_v40  ;;  %v667_v53 = vsel %vm666_vm8, %v663_v43, %v665_v42 }
  0x9a   :  { %v672_v57 = vsel %vm45_vm0, %v667_v53, 0 }
  0x9c   :  { %v945_v50 = vpop.permute.xlu1 %944  ;;  %v943_v51 = vpop.permute.xlu0 %942 }
  0x9d   :  { %v947_v54 = vsel %vm946_vm9, %v943_v51, %v945_v50 }
  0x9e   :  { %v952_v58 = vsel %vm45_vm0, %v947_v54, 0 }
  0xa0   :  { %v733_v52 = vpop.permute.xlu1 %732  ;;  %v731_v59 = vpop.permute.xlu0 %730 }
  0xa1   :  { %v734_v63 = vsel %vm97_vm2, %v731_v59, %v733_v52 }
  0xa2   :  { %1231 = vmatmul.mubr.msk.bf16.vlgmr.msra.gmra.mrb[0].mxu0 %vm41_vm3, %v1228_v46  ;;  %1246 = vmatmul.mubr.msk.bf16.vlgmr.msra.gmra.mrb[0].mxu1 %vm41_vm3, %v1243_v47  ;;  %v739_v4 = vsel %vm45_vm0, %v734_v63, 0 }
  0xa3   :  { %622 = vmatpush1.bf16.msra.mxu0 %v616_v48  ;;  %902 = vmatpush1.bf16.msra.mxu1 %v896_v49 }
  0xa4   :  { %653 = vmatprep.mubr.bf16.mxu0 %v1356_v1  ;;  %1254 = vmatprep.subr.msk.bf16.mxu0 %vm45_vm0, %v665_v42  ;;  %v1013_v60 = vpop.permute.xlu1 %1012  ;;  %v1011_v61 = vpop.permute.xlu0 %1010 }
  0xa5   :  { %933 = vmatprep.mubr.bf16.mxu1 %v1356_v1  ;;  %1271 = vmatprep.subr.msk.bf16.mxu1 %vm45_vm0, %v945_v50  ;;  %v1014_v0 = vsel %vm384_vm4, %v1011_v61, %v1013_v60 }
  0xa6   :  { %v1019_v5 = vsel %vm45_vm0, %v1014_v0, 0 }
  0xa8   :  { %v802_v62 = vpop.permute.xlu1 %801  ;;  %v800_v6 = vpop.permute.xlu0 %799 }
  0xa9   :  { %v803_v9 = vsel %vm39_vm1, %v800_v6, %v802_v62 }
  0xaa   :  { %1253 = vmatmul.mubr.msk.bf16.vlgmr.msra.gmra.mrb[4].mxu0 %vm41_vm3, %v1250_v55  ;;  %1270 = vmatmul.mubr.msk.bf16.vlgmr.msra.gmra.mrb[4].mxu1 %vm41_vm3, %v1267_v56  ;;  %v808_v13 = vsel %vm45_vm0, %v803_v9, 0 }
  0xab   :  { %678 = vmatpush1.bf16.msra.mxu0 %v672_v57  ;;  %958 = vmatpush1.bf16.msra.mxu1 %v952_v58 }
  0xac   :  { %709 = vmatprep.mubr.bf16.mxu0 %v1356_v1  ;;  %1258 = vmatprep.subr.msk.bf16.mxu0 %vm45_vm0, %v733_v52  ;;  %v1082_v7 = vpop.permute.xlu1 %1081  ;;  %v1080_v8 = vpop.permute.xlu0 %1079 }
  0xad   :  { %989 = vmatprep.mubr.bf16.mxu1 %v1356_v1  ;;  %1275 = vmatprep.subr.msk.bf16.mxu1 %vm45_vm0, %v1013_v60  ;;  %v1083_v10 = vsel %vm97_vm2, %v1080_v8, %v1082_v7 }
  0xae   :  { %v1088_v14 = vsel %vm45_vm0, %v1083_v10, 0 }
  0xb6   :  { %1255 = vmatmul.mubr.msk.bf16.vlgmr.msra.gmra.mrb[4].mxu0 %vm41_vm3, %v1249_v2  ;;  %1272 = vmatmul.mubr.msk.bf16.vlgmr.msra.gmra.mrb[4].mxu1 %vm41_vm3, %v1266_v3 }
  0xb7   :  { %745 = vmatpush1.bf16.msra.mxu0 %v739_v4  ;;  %1025 = vmatpush1.bf16.msra.mxu1 %v1019_v5 }
  0xb8   :  { %776 = vmatprep.mubr.bf16.mxu0 %v1356_v1  ;;  %1262 = vmatprep.subr.msk.bf16.mxu0 %vm45_vm0, %v802_v62 }
  0xb9   :  { %1056 = vmatprep.mubr.bf16.mxu1 %v1356_v1  ;;  %1279 = vmatprep.subr.msk.bf16.mxu1 %vm45_vm0, %v1082_v7 }
  0xc2   :  { %1259 = vmatmul.mubr.msk.bf16.vlgmr.msra.gmra.mrb[4].mxu0 %vm41_vm3, %v1256_v11  ;;  %1276 = vmatmul.mubr.msk.bf16.vlgmr.msra.gmra.mrb[4].mxu1 %vm41_vm3, %v1273_v12 }
  0xc3   :  { %814 = vmatpush1.bf16.msra.mxu0 %v808_v13  ;;  %1094 = vmatpush1.bf16.msra.mxu1 %v1088_v14 }
  0xc4   :  { %845 = vmatprep.mubr.bf16.mxu0 %v1356_v1  ;;  %1125 = vmatprep.mubr.bf16.mxu1 %v1356_v1  ;;  %v286_v1 = vsub.s32 0, %v285_v18 }
  0xc6   :  { %v287_v22 = vrot.slane %v21_v20, %v286_v1 }
  0xce   :  { %1263 = vmatmul.mubr.msk.bf16.vlgmr.msra.gmra.mrb[4].mxu0 %vm41_vm3, %v1260_v15  ;;  %1280 = vmatmul.mubr.msk.bf16.vlgmr.msra.gmra.mrb[4].mxu1 %vm41_vm3, %v1277_v16 }
 0x175   :  { %v274_v23 = vpop.f32.mrb[0].mxu0  ;;  %v566_v24 = vpop.f32.mrb[0].mxu1 }
 0x176   :  { %v276_v25 = vpop.f32.mrb[1].mxu0  ;;  %v568_v26 = vpop.f32.mrb[1].mxu1  ;;  %v1577_v31 = vmul.f32 %v287_v22, %v274_v23  ;;  %v1579_v32 = vmul.f32 %v566_v24, %v287_v22 }
 0x177   :  { %v295_v27 = vmul.f32 %v291_v21, %v276_v25  ;;  %v576_v28 = vmul.f32 %v568_v26, %v291_v21  ;;  %v278_v29 = vpop.f32.mrb[2].mxu0  ;;  %v570_v30 = vpop.f32.mrb[2].mxu1  ;;  %v1157_v26 = vld [vmem:[%s1669_s2] sm:$0xff] }
 0x178   :  { %v279_v33 = vpop.f32.mrb[3].mxu0  ;;  %v571_v34 = vpop.f32.mrb[3].mxu1  ;;  %v304_v42 = vmul.f32 %v1577_v31, %v1577_v31  ;;  %v585_v45 = vmul.f32 %v1579_v32, %v1579_v32  ;;  %v1161_v29 = vld [vmem:[%s1670_s3] sm:$0xff] }
 0x179   :  { %298 = vst.msk [vmem:[%s1668_s5 + $0x8] sm:$0xff] %vm297_vm10, %v295_v27  ;;  %1248 = vst.msk [vmem:[%s1668_s5 + $0x18] sm:$0xff] %vm297_vm10, %v576_v28  ;;  %v299_v35 = vsel %vm297_vm10, %v295_v27, 0.0  ;;  %v580_v36 = vsel %vm297_vm10, %v576_v28, 0.0  ;;  %v305_v37 = vmul.f32 %v295_v27, %v295_v27  ;;  %v586_v41 = vmul.f32 %v576_v28, %v576_v28 }
 0x17a   :  { %v300_v38 = vadd.f32 %v299_v35, %v1577_v31  ;;  %v581_v39 = vadd.f32 %v580_v36, %v1579_v32 }
 0x17b   :  { %v306_v40 = vsel %vm297_vm10, %v305_v37, 0.0  ;;  %v587_v44 = vsel %vm297_vm10, %v586_v41, 0.0 }
 0x17c   :  { %301 = vadd.xlane.f32.xlu0 %v300_v38  ;;  %582 = vadd.xlane.f32.xlu1 %v581_v39  ;;  %v307_v43 = vadd.f32 %v306_v40, %v304_v42  ;;  %v588_v46 = vadd.f32 %v587_v44, %v585_v45 }
 0x180   :  { %308 = vadd.xlane.f32.xlu0 %v307_v43  ;;  %v1165_v35 = vld [vmem:[%s1668_s5 + $0x8] sm:$0xff]  ;;  %v1284_v36 = vld [vmem:[%s1668_s5 + $0x18] sm:$0xff] }
 0x184   :  { %589 = vadd.xlane.f32.xlu0 %v588_v46 }
 0x1a1   :  { %v847_v47 = vpop.f32.mrb[4].mxu0  ;;  %v1127_v48 = vpop.f32.mrb[4].mxu1 }
 0x1a2   :  { %v1599_v49 = vmul.f32 %v847_v47, %v287_v22  ;;  %v849_v50 = vpop.f32.mrb[5].mxu0  ;;  %v1129_v51 = vpop.f32.mrb[5].mxu1  ;;  %v1136_v61 = vmul.f32 %v1127_v48, %v287_v22 }
 0x1a3   :  { %v857_v52 = vmul.f32 %v849_v50, %v291_v21  ;;  %v1137_v53 = vmul.f32 %v1129_v51, %v291_v21  ;;  %v851_v54 = vpop.f32.mrb[6].mxu0  ;;  %v1131_v55 = vpop.f32.mrb[6].mxu1 }
 0x1a4   :  { %v852_v56 = vpop.f32.mrb[7].mxu0  ;;  %v1132_v57 = vpop.f32.mrb[7].mxu1  ;;  %v866_v63 = vmul.f32 %v1599_v49, %v1599_v49  ;;  %v1146_v6 = vmul.f32 %v1136_v61, %v1136_v61 }
 0x1a5   :  { %1265 = vst.msk [vmem:[%s1668_s5 + $0x28] sm:$0xff] %vm297_vm10, %v857_v52  ;;  %1282 = vst.msk [vmem:[%s1668_s5 + $0x38] sm:$0xff] %vm297_vm10, %v1137_v53  ;;  %v861_v58 = vsel %vm297_vm10, %v857_v52, 0.0  ;;  %v867_v59 = vmul.f32 %v857_v52, %v857_v52  ;;  %v1147_v60 = vmul.f32 %v1137_v53, %v1137_v53  ;;  %v1141_v2 = vsel %vm297_vm10, %v1137_v53, 0.0 }
 0x1a6   :  { %v862_v62 = vadd.f32 %v861_v58, %v1599_v49  ;;  %v1142_v5 = vadd.f32 %v1141_v2, %v1136_v61 }
 0x1a7   :  { %v868_v0 = vsel %vm297_vm10, %v867_v59, 0.0  ;;  %v1148_v4 = vsel %vm297_vm10, %v1147_v60, 0.0 }
 0x1a8   :  { %863 = vadd.xlane.f32.xlu1 %v862_v62  ;;  %v869_v3 = vadd.f32 %v868_v0, %v866_v63  ;;  %v1149_v7 = vadd.f32 %v1148_v4, %v1146_v6 }
 0x1aa   :  { %870 = vadd.xlane.f32.xlu0 %v869_v3 }
 0x1ac   :  { %1143 = vadd.xlane.f32.xlu1 %v1142_v5  ;;  %v1288_v37 = vld [vmem:[%s1668_s5 + $0x28] sm:$0xff]  ;;  %v1292_v38 = vld [vmem:[%s1668_s5 + $0x38] sm:$0xff] }
 0x1ae   :  { %1150 = vadd.xlane.f32.xlu0 %v1149_v7 }
 0x209   :  { %v302_v8 = vpop.xlane.xlu0 %301  ;;  %v583_v10 = vpop.xlane.xlu1 %582 }
 0x20a   :  { %v584_v13 = vadd.f32 %v583_v10, %v302_v8 }
 0x20d   :  { %v309_v9 = vpop.xlane.xlu0 %308 }
 0x211   :  { %v590_v11 = vpop.xlane.xlu0 %589 }
 0x212   :  { %v591_v15 = vadd.f32 %v590_v11, %v309_v9 }
 0x235   :  { %v864_v12 = vpop.xlane.xlu1 %863 }
 0x236   :  { %v865_v16 = vadd.f32 %v864_v12, %v584_v13 }
 0x237   :  { %v871_v14 = vpop.xlane.xlu0 %870 }
 0x238   :  { %v872_v18 = vadd.f32 %v871_v14, %v591_v15 }
 0x239   :  { %v1144_v17 = vpop.xlane.xlu1 %1143 }
 0x23a   :  { %v1145_v19 = vadd.f32 %v1144_v17, %v865_v16 }
 0x23b   :  { %v1151_v20 = vpop.xlane.xlu0 %1150 }
 0x23c   :  { %v1153_v1 = vmul.f32 0.001953125, %v1145_v19  ;;  %v1152_v21 = vadd.f32 %v1151_v20, %v872_v18 }
 0x23e   :  { %v1155_v22 = vmul.f32 %v1153_v1, %v1153_v1  ;;  %v1154_v23 = vmul.f32 0.001953125, %v1152_v21 }
 0x240   :  { %v1156_v24 = vsub.f32 %v1154_v23, %v1155_v22 }
 0x242   :  { %v1158_v25 = vadd.f32 0.001, %v1156_v24 }
 0x244   :  { %1354 = vrsqrt.f32 %v1158_v25 }
 0x24e   :  { %v1355_v27 = vpop.eup %1354 }
 0x24f   :  { %v1160_v28 = vmul.f32 %v1355_v27, %v1157_v26 }
 0x251   :  { %1168 = vperm.xlu1 %1352, %v1160_v28   ;;  %v1162_v30 = vmul.f32 %v1160_v28, %v1153_v1 }
 0x253   :  { %v1163_v33 = vsub.f32 %v1161_v29, %v1162_v30 }
 0x255   :  { %1175 = vperm.xlu0 %1353, %v1163_v33  }
 0x2d0   :  { %v1169_v34 = vpop.permute.xlu1 %1168 }
 0x2d1   :  { %v1171_v39 = vmul.f32 %v1169_v34, %v1577_v31  ;;  %v1172_v40 = vmul.f32 %v1169_v34, %v1165_v35  ;;  %v1186_v41 = vmul.f32 %v1169_v34, %v1579_v32  ;;  %v1187_v42 = vmul.f32 %v1284_v36, %v1169_v34 }
 0x2d2   :  { %v1196_v43 = vmul.f32 %v1169_v34, %v1599_v49  ;;  %v1197_v44 = vmul.f32 %v1288_v37, %v1169_v34  ;;  %v1206_v45 = vmul.f32 %v1169_v34, %v1136_v61  ;;  %v1207_v46 = vmul.f32 %v1292_v38, %v1169_v34 }
 0x2d4   :  { %v1176_v47 = vpop.permute.xlu0 %1175 }
 0x2d5   :  { %v1178_v48 = vadd.f32 %v1176_v47, %v1171_v39  ;;  %v1179_v50 = vadd.f32 %v1176_v47, %v1172_v40  ;;  %v1188_v51 = vadd.f32 %v1186_v41, %v1176_v47  ;;  %v1189_v52 = vadd.f32 %v1187_v42, %v1176_v47 }
 0x2d6   :  { %v1198_v53 = vadd.f32 %v1196_v43, %v1176_v47  ;;  %v1199_v54 = vadd.f32 %v1197_v44, %v1176_v47  ;;  %v1208_v55 = vadd.f32 %v1206_v45, %v1176_v47  ;;  %v1209_v56 = vadd.f32 %v1207_v46, %v1176_v47 }
 0x2d7   :  { %v1180_v57 = vmax.f32 %v1178_v48, 0.0  ;;  %v1181_v31 = vmax.f32 %v1179_v50, 0.0  ;;  %v1190_v58 = vmax.f32 %v1188_v51, 0.0  ;;  %v1191_v59 = vmax.f32 %v1189_v52, 0.0 }
 0x2d8   :  { %v1200_v32 = vmax.f32 %v1198_v53, 0.0  ;;  %v1201_v60 = vmax.f32 %v1199_v54, 0.0  ;;  %v1210_v62 = vmax.f32 %v1208_v55, 0.0  ;;  %v1211_v49 = vmax.f32 %v1209_v56, 0.0 }
 0x2d9   :  { %1182 = vst [vmem:[%s1668_s5] sm:$0xff] %v1180_v57  ;;  %1183 = vst.msk [vmem:[%s1668_s5 + $0x8] sm:$0xff] %vm297_vm10, %v1181_v31 }
 0x2da   :  { %1285 = vst [vmem:[%s1668_s5 + $0x10] sm:$0xff] %v1190_v58  ;;  %1286 = vst.msk [vmem:[%s1668_s5 + $0x18] sm:$0xff] %vm297_vm10, %v1191_v59 }
 0x2db   :  { %1289 = vst [vmem:[%s1668_s5 + $0x20] sm:$0xff] %v1200_v32  ;;  %1290 = vst.msk [vmem:[%s1668_s5 + $0x28] sm:$0xff] %vm297_vm10, %v1201_v60 }
 0x2dc   :  { %1293 = vst [vmem:[%s1668_s5 + $0x30] sm:$0xff] %v1210_v62  ;;  %1294 = vst.msk [vmem:[%s1668_s5 + $0x38] sm:$0xff] %vm297_vm10, %v1211_v49 }

</bundles_post_ra>
